<compile_context>
chip_gen: v6e
topology: v6e:2x2x1
jax: 0.10.0
libtpu: 0.0.40
codegen_flags: <defaults>
</compile_context>

<pallas_src>
import functools

import jax
import jax.numpy as jnp
from jax import lax
from jax.experimental import pallas as pl
from jax.experimental.pallas import tpu as pltpu


def _l2_normalize(x):
    """F.normalize(p=2, dim=-1): rsqrt with the eps clamp on the squared norm."""
    x = x.astype(jnp.float32)
    ss = jnp.sum(x * x, axis=-1, keepdims=True)
    return x * lax.rsqrt(jnp.maximum(ss, 1e-24))


def _clip_lse_kernel(t_row_ref, n_row_ref, t_col_ref, n_col_ref,
                     out_ref, l1_ref, l2_ref,
                     *, inv_temp: float, n_valid: int, tn: int,
                     need_col_mask: bool):
    """Per row-tile i: accumulate exp-sums of both logit directions over
    column tiles j; at j == last emit lse1 + lse2 per row (shape (tm, 1))."""
    j = pl.program_id(1)

    # Reset exp-sum accumulators at the start of every column sweep.
    @pl.when(j == 0)
    def _():
        l1_ref[...] = jnp.zeros_like(l1_ref)
        l2_ref[...] = jnp.zeros_like(l2_ref)

    tr = t_row_ref[...]   # (tm, D) bf16, text rows,   scaled by sqrt(1/temp)
    nr = n_row_ref[...]   # (tm, D) bf16, neural rows, scaled by sqrt(1/temp)
    tc = t_col_ref[...]   # (tn, D) bf16, text cols
    nc = n_col_ref[...]   # (tn, D) bf16, neural cols

    # Contract the last (lane) dims on the MXU; bf16 operands, f32 accumulate.
    dn = (((1,), (1,)), ((), ()))
    s1 = lax.dot_general(tr, nc, dn, preferred_element_type=jnp.float32)  # (tm, tn)
    s2 = lax.dot_general(nr, tc, dn, preferred_element_type=jnp.float32)  # (tm, tn)

    # Fixed max = 1/temperature (|cos| <= 1): no running max / rescale needed.
    p1 = jnp.exp(s1 - inv_temp)
    p2 = jnp.exp(s2 - inv_temp)

    if need_col_mask:
        # Padded columns (global index >= n_valid) must not contribute.
        col = j * tn + lax.broadcasted_iota(jnp.int32, p1.shape, 1)
        valid = col < n_valid
        p1 = jnp.where(valid, p1, 0.0)
        p2 = jnp.where(valid, p2, 0.0)

    # Deferred lane reduction: fold tn into 128 lanes with pure VPU adds of
    # lane-aligned slices; the cross-lane (XLU) reduce happens once at the end.
    acc1 = p1[:, 0:128]
    acc2 = p2[:, 0:128]
    for c in range(1, tn // 128):
        acc1 = acc1 + p1[:, c * 128:(c + 1) * 128]
        acc2 = acc2 + p2[:, c * 128:(c + 1) * 128]
    l1_ref[...] += acc1
    l2_ref[...] += acc2

    # Finalize: lse1 + lse2 per row (diag is subtracted in the JAX epilogue).
    @pl.when(j == pl.num_programs(1) - 1)
    def _():
        l1 = jnp.sum(l1_ref[...], axis=-1, keepdims=True)   # (tm, 1)
        l2 = jnp.sum(l2_ref[...], axis=-1, keepdims=True)   # (tm, 1)
        l1 = jnp.maximum(l1, 1e-30)   # guard against full-row underflow
        l2 = jnp.maximum(l2, 1e-30)
        out_ref[...] = (2.0 * inv_temp + jnp.log(l1) + jnp.log(l2)
                        ).astype(out_ref.dtype)


def _pick_tile(n_pad: int, preferred: int) -> int:
    """n_pad is a multiple of 128; pick the largest candidate tile dividing it."""
    for t in (preferred, 512, 256, 128):
        if t <= n_pad and n_pad % t == 0:
            return t
    return 128


def clip_loss(neural_embeddings: jax.Array,
              text_embeddings: jax.Array,
              temperature: float = 0.07,
              block_rows: int = 256,
              block_cols: int = 256,
              matmul_dtype=jnp.bfloat16,
              vmem_limit_bytes=None) -> jax.Array:
    """CLIP loss (scalar f32) for (B, D) neural / text embeddings."""
    assert neural_embeddings.shape == text_embeddings.shape
    assert neural_embeddings.ndim == 2
    B, D = neural_embeddings.shape
    inv_temp = 1.0 / float(temperature)

    # ---- tiny JAX prologue (O(B*D)): normalize once, take the diagonal in
    # f32, fold sqrt(1/temp) into both sides, cast to bf16 MXU operands. ----
    t_n = _l2_normalize(text_embeddings)
    n_n = _l2_normalize(neural_embeddings)
    diag = jnp.sum(t_n * n_n, axis=-1) * inv_temp          # (B,) f32

    B_pad = ((B + 127) // 128) * 128
    if B_pad != B:
        pad = B_pad - B
        t_n = jnp.pad(t_n, ((0, pad), (0, 0)))
        n_n = jnp.pad(n_n, ((0, pad), (0, 0)))

    scale = inv_temp ** 0.5                                 # symmetric fold
    t_s = (t_n * scale).astype(matmul_dtype)
    n_s = (n_n * scale).astype(matmul_dtype)

    # ---- tiling ----
    tm = _pick_tile(B_pad, block_rows)
    if B_pad >= 256:
        tm = min(tm, B_pad // 2)        # >= 2 row tiles: keep both v7x TCs busy
    tn = _pick_tile(B_pad, block_cols)
    grid = (B_pad // tm, B_pad // tn)

    kernel = functools.partial(
        _clip_lse_kernel, inv_temp=inv_temp, n_valid=B, tn=tn,
        need_col_mask=(B_pad != B))

    op_bytes = jnp.dtype(matmul_dtype).itemsize
    cost = pl.CostEstimate(
        flops=4 * B_pad * B_pad * D,
        transcendentals=2 * B_pad * B_pad,
        bytes_accessed=(2 * B_pad * D * op_bytes                 # row streams
                        + 2 * grid[0] * B_pad * D * op_bytes     # column streams
                        + 4 * B_pad))

    lse_sum = pl.pallas_call(
        kernel,
        out_shape=jax.ShapeDtypeStruct((B_pad, 1), jnp.float32),
        grid=grid,
        in_specs=[
            pl.BlockSpec((tm, D), lambda i, j: (i, 0)),   # text,   row tile i
            pl.BlockSpec((tm, D), lambda i, j: (i, 0)),   # neural, row tile i
            pl.BlockSpec((tn, D), lambda i, j: (j, 0)),   # text,   col tile j
            pl.BlockSpec((tn, D), lambda i, j: (j, 0)),   # neural, col tile j
        ],
        out_specs=pl.BlockSpec((tm, 1), lambda i, j: (i, 0)),
        scratch_shapes=[pltpu.VMEM((tm, 128), jnp.float32)] * 2,   # l1, l2
        compiler_params=pltpu.CompilerParams(
            dimension_semantics=("parallel", "arbitrary"),
            vmem_limit_bytes=vmem_limit_bytes),
        cost_estimate=cost,
    )(t_s, n_s, t_s, n_s)

    # Epilogue: mean over valid rows of (lse1 + lse2 - 2*diag), halved.
    return (jnp.sum(lse_sum[:B, 0]) - 2.0 * jnp.sum(diag)) / (2.0 * B)


def _reference(neural, text, temperature=0.07):
    """Pure-JAX mirror of the PyTorch CLIPLoss module."""
    n = neural / jnp.maximum(
        jnp.linalg.norm(neural, axis=-1, keepdims=True), 1e-12)
    t = text / jnp.maximum(
        jnp.linalg.norm(text, axis=-1, keepdims=True), 1e-12)
    logits = t @ n.T / temperature
    B = logits.shape[0]
    idx = jnp.arange(B)

    def ce(lg):
        lse = jax.nn.logsumexp(lg, axis=1)
        return jnp.mean(lse - lg[idx, idx])

    return (ce(logits) + ce(logits.T)) / 2.0


if __name__ == "__main__":
    key = jax.random.PRNGKey(0)
    k1, k2, k3, k4 = jax.random.split(key, 4)

    # Case 1: B multiple of 128, explicit 128x128 tiles -> grid (2, 2),
    # exercises multi-step column accumulation (no padding path).
    B1, D1 = 256, 128
    neural1 = jax.random.normal(k1, (B1, D1), dtype=jnp.float32)
    text1 = jax.random.normal(k2, (B1, D1), dtype=jnp.float32)
    loss1 = jax.block_until_ready(
        clip_loss(neural1, text1, temperature=0.07,
                  block_rows=128, block_cols=128))
    ref1 = _reference(neural1, text1, temperature=0.07)
    assert jnp.allclose(loss1, ref1, rtol=2e-2, atol=2e-2), (loss1, ref1)

    # Case 2: ragged B -> padded to 128 with column masking + row exclusion.
    B2, D2 = 100, 64
    neural2 = jax.random.normal(k3, (B2, D2), dtype=jnp.float32)
    text2 = jax.random.normal(k4, (B2, D2), dtype=jnp.float32)
    loss2 = jax.block_until_ready(clip_loss(neural2, text2, temperature=0.07))
    ref2 = _reference(neural2, text2, temperature=0.07)
    assert jnp.allclose(loss2, ref2, rtol=2e-2, atol=2e-2), (loss2, ref2)

    print("KERNEL_OK")
</pallas_src>

<mosaic_0001>
module attributes {stable_mosaic.version = 11 : i64} {
  func.func @_clip_lse_kernel(%arg0: i32, %arg1: i32, %arg2: memref<128x128xbf16, #tpu.memory_space<vmem>>, %arg3: memref<128x128xbf16, #tpu.memory_space<vmem>>, %arg4: memref<128x128xbf16, #tpu.memory_space<vmem>>, %arg5: memref<128x128xbf16, #tpu.memory_space<vmem>>, %arg6: memref<128x1xf32, #tpu.memory_space<vmem>>, %arg7: memref<128x128xf32, #tpu.memory_space<vmem>>, %arg8: memref<128x128xf32, #tpu.memory_space<vmem>>) attributes {dimension_semantics = [#tpu.dimension_semantics<parallel>, #tpu.dimension_semantics<arbitrary>], iteration_bounds = array<i64: 2, 2>, scalar_prefetch = 0 : i64, scratch_operands = 2 : i64, tpu.core_type = #tpu.core_type<tc>, window_params = [{transform_indices = @transform_0, window_bounds = array<i64: 128, 128>}, {transform_indices = @transform_1, window_bounds = array<i64: 128, 128>}, {transform_indices = @transform_2, window_bounds = array<i64: 128, 128>}, {transform_indices = @transform_3, window_bounds = array<i64: 128, 128>}, {transform_indices = @transform_4, window_bounds = array<i64: 128, 1>}]} {
    %c0_i32 = arith.constant 0 : i32
    %0 = arith.cmpi eq, %arg1, %c0_i32 : i32
    %1 = arith.extui %0 : i1 to i32
    %c0_i32_0 = arith.constant 0 : i32
    %2 = arith.cmpi ne, %1, %c0_i32_0 : i32
    scf.if %2 {
      %cst_20 = arith.constant 0.000000e+00 : f32
      %24 = vector.broadcast %cst_20 : f32 to vector<128x128xf32>
      %c0_21 = arith.constant 0 : index
      %c0_22 = arith.constant 0 : index
      %25 = vector.load %arg7[%c0_21, %c0_22] : memref<128x128xf32, #tpu.memory_space<vmem>>, vector<128x128xf32>
      tpu.vector_store %arg7[%c0_21, %c0_22], %24 {strides = array<i32>} : memref<128x128xf32, #tpu.memory_space<vmem>>, vector<128x128xf32>,
      %cst_23 = arith.constant 0.000000e+00 : f32
      %26 = vector.broadcast %cst_23 : f32 to vector<128x128xf32>
      %c0_24 = arith.constant 0 : index
      %c0_25 = arith.constant 0 : index
      %27 = vector.load %arg8[%c0_24, %c0_25] : memref<128x128xf32, #tpu.memory_space<vmem>>, vector<128x128xf32>
      tpu.vector_store %arg8[%c0_24, %c0_25], %26 {strides = array<i32>} : memref<128x128xf32, #tpu.memory_space<vmem>>, vector<128x128xf32>,
    } else {
    }
    %c0 = arith.constant 0 : index
    %c0_1 = arith.constant 0 : index
    %3 = vector.load %arg2[%c0, %c0_1] : memref<128x128xbf16, #tpu.memory_space<vmem>>, vector<128x128xbf16>
    %c0_2 = arith.constant 0 : index
    %c0_3 = arith.constant 0 : index
    %4 = vector.load %arg3[%c0_2, %c0_3] : memref<128x128xbf16, #tpu.memory_space<vmem>>, vector<128x128xbf16>
    %c0_4 = arith.constant 0 : index
    %c0_5 = arith.constant 0 : index
    %5 = vector.load %arg4[%c0_4, %c0_5] : memref<128x128xbf16, #tpu.memory_space<vmem>>, vector<128x128xbf16>
    %c0_6 = arith.constant 0 : index
    %c0_7 = arith.constant 0 : index
    %6 = vector.load %arg5[%c0_6, %c0_7] : memref<128x128xbf16, #tpu.memory_space<vmem>>, vector<128x128xbf16>
    %cst = arith.constant dense<0.000000e+00> : vector<128x128xf32>
    %7 = tpu.matmul %3, %6, %cst {dimension_numbers = #tpu.dot_dimension_numbers<[1], [1], [0], [0], [0, 0, 1, 0], [], []>} : vector<128x128xbf16>, vector<128x128xbf16>, vector<128x128xf32> -> vector<128x128xf32>
    %cst_8 = arith.constant dense<0.000000e+00> : vector<128x128xf32>
    %8 = tpu.matmul %4, %5, %cst_8 {dimension_numbers = #tpu.dot_dimension_numbers<[1], [1], [0], [0], [0, 0, 1, 0], [], []>} : vector<128x128xbf16>, vector<128x128xbf16>, vector<128x128xf32> -> vector<128x128xf32>
    %cst_9 = arith.constant 14.2857141 : f32
    %9 = vector.broadcast %cst_9 : f32 to vector<128x128xf32>
    %10 = arith.subf %7, %9 : vector<128x128xf32>
    %11 = math.exp %10 : vector<128x128xf32>
    %cst_10 = arith.constant 14.2857141 : f32
    %12 = vector.broadcast %cst_10 : f32 to vector<128x128xf32>
    %13 = arith.subf %8, %12 : vector<128x128xf32>
    %14 = math.exp %13 : vector<128x128xf32>
    %c0_11 = arith.constant 0 : index
    %c0_12 = arith.constant 0 : index
    %15 = vector.load %arg7[%c0_11, %c0_12] : memref<128x128xf32, #tpu.memory_space<vmem>>, vector<128x128xf32>
    %16 = arith.addf %15, %11 : vector<128x128xf32>
    %c0_13 = arith.constant 0 : index
    %c0_14 = arith.constant 0 : index
    %17 = vector.load %arg7[%c0_13, %c0_14] : memref<128x128xf32, #tpu.memory_space<vmem>>, vector<128x128xf32>
    tpu.vector_store %arg7[%c0_13, %c0_14], %16 {strides = array<i32>} : memref<128x128xf32, #tpu.memory_space<vmem>>, vector<128x128xf32>,
    %c0_15 = arith.constant 0 : index
    %c0_16 = arith.constant 0 : index
    %18 = vector.load %arg8[%c0_15, %c0_16] : memref<128x128xf32, #tpu.memory_space<vmem>>, vector<128x128xf32>
    %19 = arith.addf %18, %14 : vector<128x128xf32>
    %c0_17 = arith.constant 0 : index
    %c0_18 = arith.constant 0 : index
    %20 = vector.load %arg8[%c0_17, %c0_18] : memref<128x128xf32, #tpu.memory_space<vmem>>, vector<128x128xf32>
    tpu.vector_store %arg8[%c0_17, %c0_18], %19 {strides = array<i32>} : memref<128x128xf32, #tpu.memory_space<vmem>>, vector<128x128xf32>,
    %c1_i32 = arith.constant 1 : i32
    %21 = arith.cmpi eq, %arg1, %c1_i32 : i32
    %22 = arith.extui %21 : i1 to i32
    %c0_i32_19 = arith.constant 0 : i32
    %23 = arith.cmpi ne, %22, %c0_i32_19 : i32
    scf.if %23 {
      %c0_20 = arith.constant 0 : index
      %c0_21 = arith.constant 0 : index
      %24 = vector.load %arg7[%c0_20, %c0_21] : memref<128x128xf32, #tpu.memory_space<vmem>>, vector<128x128xf32>
      %cst_22 = arith.constant dense<0.000000e+00> : vector<128xf32>
      %25 = vector.multi_reduction <add>, %24, %cst_22 [1] : vector<128x128xf32> to vector<128xf32>
      %26 = vector.shape_cast %25 : vector<128xf32> to vector<128x1xf32>
      %c0_23 = arith.constant 0 : index
      %c0_24 = arith.constant 0 : index
      %27 = vector.load %arg8[%c0_23, %c0_24] : memref<128x128xf32, #tpu.memory_space<vmem>>, vector<128x128xf32>
      %cst_25 = arith.constant dense<0.000000e+00> : vector<128xf32>
      %28 = vector.multi_reduction <add>, %27, %cst_25 [1] : vector<128x128xf32> to vector<128xf32>
      %29 = vector.shape_cast %28 : vector<128xf32> to vector<128x1xf32>
      %cst_26 = arith.constant 1.000000e-30 : f32
      %30 = vector.broadcast %cst_26 : f32 to vector<128x1xf32>
      %31 = arith.maximumf %26, %30 : vector<128x1xf32>
      %cst_27 = arith.constant 1.000000e-30 : f32
      %32 = vector.broadcast %cst_27 : f32 to vector<128x1xf32>
      %33 = arith.maximumf %29, %32 : vector<128x1xf32>
      %34 = math.log %31 : vector<128x1xf32>
      %cst_28 = arith.constant 28.5714283 : f32
      %35 = vector.broadcast %cst_28 : f32 to vector<128x1xf32>
      %36 = arith.addf %35, %34 : vector<128x1xf32>
      %37 = math.log %33 : vector<128x1xf32>
      %38 = arith.addf %36, %37 : vector<128x1xf32>
      %c0_29 = arith.constant 0 : index
      %c0_30 = arith.constant 0 : index
      %39 = vector.load %arg6[%c0_29, %c0_30] : memref<128x1xf32, #tpu.memory_space<vmem>>, vector<128x1xf32>
      tpu.vector_store %arg6[%c0_29, %c0_30], %38 {strides = array<i32>} : memref<128x1xf32, #tpu.memory_space<vmem>>, vector<128x1xf32>,
    } else {
    }
    return
  }
  func.func @transform_0(%arg0: i32, %arg1: i32) -> (i32, i32) {
    %c0_i32 = arith.constant 0 : i32
    %c0_i32_0 = arith.constant 0 : i32
    return %arg0, %c0_i32 : i32, i32
  }
  func.func @transform_1(%arg0: i32, %arg1: i32) -> (i32, i32) {
    %c0_i32 = arith.constant 0 : i32
    %c0_i32_0 = arith.constant 0 : i32
    return %arg0, %c0_i32 : i32, i32
  }
  func.func @transform_2(%arg0: i32, %arg1: i32) -> (i32, i32) {
    %c0_i32 = arith.constant 0 : i32
    %c0_i32_0 = arith.constant 0 : i32
    return %arg1, %c0_i32 : i32, i32
  }
  func.func @transform_3(%arg0: i32, %arg1: i32) -> (i32, i32) {
    %c0_i32 = arith.constant 0 : i32
    %c0_i32_0 = arith.constant 0 : i32
    return %arg1, %c0_i32 : i32, i32
  }
  func.func @transform_4(%arg0: i32, %arg1: i32) -> (i32, i32) {
    %c0_i32 = arith.constant 0 : i32
    %c0_i32_0 = arith.constant 0 : i32
    return %arg0, %c0_i32 : i32, i32
  }
}

</mosaic_0001>

<bundles_post_ra>
// kernel: tpu_custom_call.1
= control target key start
LH: loop header
LB: loop body
LE: loop exit
PB: predicated region body
PF: predicated region fallthrough
CT: control target
= control target key end

     0   :  { %s2502_s0 = inlined_call_operand.hbm [shape: bf16[256,128], index: 0, kind: input, shape index: {}]   ;;  %s2503_s1 = inlined_call_operand.hbm [shape: bf16[256,128], index: 1, kind: input, shape index: {}]   ;;  %s2504_s2 = inlined_call_operand.hbm [shape: bf16[256,128], index: 2, kind: input, shape index: {}]   ;;  %s2505_s3 = inlined_call_operand.hbm [shape: bf16[256,128], index: 3, kind: input, shape index: {}]   ;;  %s2506_s4 = inlined_call_operand.vmem [shape: f32[256,1], index: 4, kind: output, shape index: {}]  }
   0x1   :  { %2516 = sst [smem:[#allocation17_spill]] %s2502_s0 }
   0x2   :  { %2517 = sst [smem:[#allocation18_spill]] %s2503_s1 }
   0x3   :  { %2518 = sst [smem:[#allocation19_spill]] %s2504_s2 }
   0x4   :  { %2519 = sst [smem:[#allocation20_spill]] %s2506_s4 }
   0x5   :  { %9 = vsyncpa [#allocation5], 0 }
   0x6   :  { %11 = vsyncpa [#allocation5 + $0x1], 0 }
   0x7   :  { %12 = vsyncpa [#allocation7], 0 }
   0x8   :  { %14 = vsyncpa [#allocation7 + $0x1], 0 }
   0x9   :  { %15 = vsyncpa [#allocation10], 0 }
   0xa   :  { %17 = vsyncpa [#allocation10 + $0x1], 0  ;;  %s2133_s15 = smov 0   ;;  %s2135_s16 = smov 0  }
   0xb   :  { %s2137_s17 = smov 0   ;;  %s2139_s18 = smov 0  }
   0xc   :  { %s2141_s19 = smov 0   ;;  %s2143_s20 = smov 0  }
   0xd   :  { %s2145_s21 = smov 0   ;;  %s2147_s22 = smov 0  }
   0xe   :  { %s2149_s23 = smov 0   ;;  %s2151_s24 = smov 0  }
   0xf   :  { %s2153_s25 = smov 0  }
  0x10 LB: > { %2520 = sst [smem:[#allocation15_spill]] %s2083_s21  ;;  %s2507_s26 = sadd.s32 4294967295, %s2099_s25   ;;  %s2099_s25 = sphi %s2153_s25, %s23_s25   ;;  %s2095_s24 = sphi %s2151_s24, %s2553_s24   ;;  %s2091_s23 = sphi %s2149_s23, %s2552_s23   ;;  %s2087_s22 = sphi %s2147_s22, %s2551_s22   ;;  %s2083_s21 = sphi %s2145_s21, %s2550_s21   ;;  %s2079_s20 = sphi %s2143_s20, %s2549_s20   ;;  %s2075_s19 = sphi %s2141_s19, %s2548_s19   ;;  %s2071_s18 = sphi %s2139_s18, %s2547_s18   ;;  %s2067_s17 = sphi %s2137_s17, %s2546_s17   ;;  %s2063_s16 = sphi %s2135_s16, %s2545_s16   ;;  %s2059_s15 = sphi %s2133_s15, %s2544_s15  }
  0x11   : > { %p49_p0 = scmp.ne.s32.totalorder %s2079_s20, %s2075_s19  ;;  %p50_p1 = scmp.eq.s32.totalorder %s2099_s25, 0 }
  0x12   : > { %p55_p2 = scmp.ne.s32.totalorder %s2075_s19, %s2071_s18  ;;  %p2195_p3 = scmp.eq.s32.totalorder %s2507_s26, 0 }
  0x13   : > { %p51_p4 = por %p50_p1, %p49_p0  ;;  %p2508_p5 = scmp.lt.s32.totalorder %s2099_s25, 4 }
  0x14   : > { %p2204_p6 = por %p2195_p3, %p55_p2  ;;  %s2509_s5 = sand.u32 1, %s2079_s20  }
  0x15   : > { %s2211_s6 = sshll.u32 %s2509_s5, 6  ;;  %s1512_s7 = sshll.u32 %s2095_s24, 10 }
  0x16   : > { %p2216_p7 = pnand %p2508_p5, %p51_p4  ;;  %s204_s9 = sand.u32 1, %s2099_s25  }
  0x17   : > { %s2524_s1 = sld [smem:[#allocation18_spill]]  ;;  %s208_s13 = scalar_lea.vmem [#allocation6], %s2211_s6 }
  0x18   : > { %s215_s14 = sshll.u32 %s208_s13, 4  ;;  %p1437_p8 = scmp.ge.s32.totalorder %s2099_s25, 1  ;;  %s216_s14 = int_to_ptr.vmem [resolvable:$true] %s215_s14 }
  0x19   : > { %p265_p9 = scmp.lt.s32.totalorder %s2099_s25, 5  ;;  %s2229_s18 = scalar_lea.sflag [#allocation7], %s204_s9 }
  0x1a   : > { %p1887_p10 = pneg %p2216_p7  ;;  %s1898_s26 = scalar_lea.vmem %s216_s14, 1024 }
  0x1b   : > { %p1899_p11 = scmp.ne.s32.totalorder %s216_s14, %s1898_s26  ;;  %s2101_s28 = smov [#allocation6]  }
  0x1c   : > { %s1903_s27 = sshll.u32 %s2101_s28, 4  ;;  %s1904_s27 = int_to_ptr.vmem [resolvable:$false] %s1903_s27 }
  0x1d   : > { %s214_s12 = scalar_lea.hbm %s2524_s1, %s1512_s7  ;;  %p1901_p12 = pnand %p1899_p11, %p1887_p10 }
  0x1e   : > { %s1905_s10 = scalar_lea.vmem %s1904_s27, 2048  ;;  %p1906_p0 = scmp.lt.s32.totalorder %s216_s14, %s1904_s27 }
  0x1f   : > { %p1902_p13 = pneg %p1901_p12  ;;  %p1907_p2 = scmp.lt.s32.totalorder %s1905_s10, %s1898_s26 }
  0x21   : > { %p1908_p4 = por %p1907_p2, %p1906_p0 }
  0x23   : > { %p1909_p5 = pnand %p1908_p4, %p1902_p13 }
  0x25   : > { %1912 = shalt.err (!%p1909_p5)
}
  0x26   : > { %s2510_s11 = smov 64   ;;  %s2512_s9 = smov 4  }
  0x27   : > { %1626 = dma.hbm_to_vmem [thread:$0]  (!%p2216_p7), %s214_s12, 1024, %s216_s14, %s2229_s18, %s2510_s11, %s2510_s11, %s2512_s9  }
  0x28   : > { %p2246_p11 = pnand %p1437_p8, %p265_p9  ;;  %s2526_s0 = sld [smem:[#allocation17_spill]] }
  0x29   : > { %s187_s10 = scalar_lea.vmem [#allocation4], %s2211_s6  ;;  %s2527_s1 = sand.u32 1, %s2079_s20  }
  0x2a   : > { %s194_s5 = sshll.u32 %s187_s10, 4  ;;  %s184_s21 = scalar_lea.sflag [#allocation5], %s2527_s1  ;;  %s195_s5 = int_to_ptr.vmem [resolvable:$true] %s194_s5 }
  0x2b   : > { %s1926_s4 = scalar_lea.vmem %s195_s5, 1024  ;;  %s2104_s12 = smov [#allocation4]  }
  0x2c   : > { %p1927_p5 = scmp.ne.s32.totalorder %s195_s5, %s1926_s4  ;;  %s1931_s14 = sshll.u32 %s2104_s12, 4  ;;  %s1932_s14 = int_to_ptr.vmem [resolvable:$false] %s1931_s14 }
  0x2d   : > { %s1933_s11 = scalar_lea.vmem %s1932_s14, 2048  ;;  %p1934_p8 = scmp.lt.s32.totalorder %s195_s5, %s1932_s14 }
  0x2e   : > { %s193_s13 = scalar_lea.hbm %s2526_s0, %s1512_s7  ;;  %p1929_p12 = pnand %p1927_p5, %p1887_p10 }
  0x2f   : > { %p1935_p9 = scmp.lt.s32.totalorder %s1933_s11, %s1926_s4 }
  0x30   : > { %p1930_p13 = pneg %p1929_p12 }
  0x31   : > { %p1936_p0 = por %p1935_p9, %p1934_p8 }
  0x33   : > { %p1937_p2 = pnand %p1936_p0, %p1930_p13 }
  0x35   : > { %1940 = shalt.err (!%p1937_p2)
}
  0x36   : > { %s2528_s6 = smov 64   ;;  %s32_s1 = sadd.s32 1, %s2091_s23 }
  0x37   : > { %1623 = dma.hbm_to_vmem [thread:$0]  (!%p2216_p7), %s193_s13, 1024, %s195_s5, %s184_s21, %s2528_s6, %s2528_s6, %s2512_s9  }
  0x38   : > { %s94_s4 = sadd.s32 1, %s2067_s17  ;;  %p33_p10 = scmp.ge.s32.totalorder %s32_s1, 2 }
  0x39   : > { %p101_p4 = scmp.ne.s32.totalorder %s2067_s17, %s2063_s16  ;;  %p107_p5 = scmp.ne.s32.totalorder %s2063_s16, %s2059_s15 }
  0x3a   : > { %s2514_s7 = sand.u32 1, %s2067_s17   ;;  %s2555_s1 = smov (%p33_p10, %s32_s1), 0 }
  0x3b   : > { %s2529_s8 = sadd.s32 1, %s2095_s24  ;;  %s91_s11 = ssub.s32 %s2091_s23, %s2555_s1 }
  0x3c   : > { %s2557_s8 = smov (!%p33_p10, %s2529_s8), %s2095_s24  ;;  %p2282_p7 = por %p101_p4, %p50_p1 }
  0x3d   : > { %p37_p12 = scmp.ge.s32.totalorder %s2557_s8, 2  ;;  %p92_p13 = scmp.eq.s32.totalorder %s91_s11, 0 }
  0x3e   : > { %p2288_p8 = por %p107_p5, %p2195_p3  ;;  %s2294_s5 = sshll.u32 %s2514_s7, 6 }
  0x3f   : > { %s2559_s8 = smov (%p37_p12, %s2557_s8), 0  ;;  %s1514_s13 = sshll.u32 %s2091_s23, 10 }
  0x40   : > { %2532 = sst [smem:[#allocation16_spill]] %s2559_s8  ;;  %s39_s28 = ssub.s32 %s2095_s24, %s2559_s8 }
  0x41   : > { %s2299_s27 = scalar_select %p92_p13, %s2067_s17, %s94_s4  }
  0x42   : > { %p40_p1 = scmp.eq.s32.totalorder %s39_s28, 0  ;;  %s2533_s2 = sld [smem:[#allocation19_spill]] }
  0x43   : > { %s229_s14 = scalar_lea.vmem [#allocation8], %s2294_s5  ;;  %s2534_s9 = sadd.s32 1, %s2079_s20 }
  0x44   : > { %s236_s11 = sshll.u32 %s229_s14, 4  ;;  %p2535_p3 = scmp.lt.s32.totalorder %s2099_s25, 4  ;;  %s237_s11 = int_to_ptr.vmem [resolvable:$true] %s236_s11 }
  0x45   : > { %s2311_s0 = scalar_select %p40_p1, %s2079_s20, %s2534_s9  }
  0x46   : > { %p2317_p9 = pnand %p2535_p3, %p2282_p7  ;;  %s2324_s28 = scalar_lea.hbm %s2505_s3, %s1514_s13 }
  0x47   : > { %s1954_s10 = scalar_lea.vmem %s237_s11, 1024  ;;  %s2105_s9 = smov [#allocation8]  }
  0x48   : > { %s235_s29 = scalar_lea.hbm %s2533_s2, %s1514_s13  ;;  %p1943_p0 = pneg %p2317_p9 }
  0x49   : > { %p1955_p2 = scmp.ne.s32.totalorder %s237_s11, %s1954_s10  ;;  %s1959_s21 = sshll.u32 %s2105_s9, 4  ;;  %s1960_s21 = int_to_ptr.vmem [resolvable:$false] %s1959_s21 }
  0x4a   : > { %s1961_s12 = scalar_lea.vmem %s1960_s21, 2048  ;;  %p1962_p5 = scmp.lt.s32.totalorder %s237_s11, %s1960_s21 }
  0x4b   : > { %p1957_p10 = pnand %p1955_p2, %p1943_p0  ;;  %p1963_p7 = scmp.lt.s32.totalorder %s1961_s12, %s1954_s10 }
  0x4d   : > { %p1958_p4 = pneg %p1957_p10  ;;  %p1964_p12 = por %p1963_p7, %p1962_p5 }
  0x4f   : > { %p1965_p13 = pnand %p1964_p12, %p1958_p4 }
  0x51   : > { %1968 = shalt.err (!%p1965_p13)
}
  0x52   : > { %s2537_s8 = smov 4   ;;  %s250_s13 = scalar_lea.vmem [#allocation9], %s2294_s5 }
  0x53   : > { %1629 = dma.hbm_to_vmem [thread:$0]  (!%p2317_p9), %s235_s29, 1024, %s237_s11, %s2229_s18, %s2528_s6, %s2528_s6, %s2537_s8  }
  0x54   : > { %s257_s14 = sshll.u32 %s250_s13, 4  ;;  %s2538_s4 = sand.u32 1, %s2067_s17   ;;  %s258_s14 = int_to_ptr.vmem [resolvable:$true] %s257_s14 }
  0x55   : > { %s247_s9 = scalar_lea.sflag [#allocation10], %s2538_s4  ;;  %s1982_s21 = scalar_lea.vmem %s258_s14, 1024 }
  0x56   : > { %p1983_p1 = scmp.ne.s32.totalorder %s258_s14, %s1982_s21  ;;  %s2106_s10 = smov [#allocation9]  }
  0x57   : > { %s1987_s12 = sshll.u32 %s2106_s10, 4  ;;  %s1988_s12 = int_to_ptr.vmem [resolvable:$false] %s1987_s12 }
  0x58   : > { %p1985_p3 = pnand %p1983_p1, %p1943_p0  ;;  %s1989_s2 = scalar_lea.vmem %s1988_s12, 2048 }
  0x59   : > { %p1990_p10 = scmp.lt.s32.totalorder %s258_s14, %s1988_s12  ;;  %p1991_p4 = scmp.lt.s32.totalorder %s1989_s2, %s1982_s21 }
  0x5a   : > { %p1986_p2 = pneg %p1985_p3 }
  0x5b   : > { %p1992_p5 = por %p1991_p4, %p1990_p10 }
  0x5d   : > { %p1993_p7 = pnand %p1992_p5, %p1986_p2 }
  0x5f   : > { %1996 = shalt.err (!%p1993_p7)
}
  0x60   : > { %1632 = dma.hbm_to_vmem [thread:$0]  (!%p2317_p9), %s2324_s28, 1024, %s258_s14, %s247_s9, %s2528_s6, %s2528_s6, %s2537_s8  }
  0x61   : > { %269 = sbr.rel (%p2246_p11) target bundleno = 675 (0x2a3), region = 36  ;;  %s271_s18 = sand.u32 (!%p2246_p11), 1, %s2075_s19  }
  0x62   : > { %s1438_s5 = sshll.u32 (!%p2246_p11), %s271_s18, 6  ;;  %s272_s29 = scalar_lea.sflag (!%p2246_p11), [#allocation5], %s271_s18 }
  0x63   : > { %s2352_s11 = scalar_lea.vmem (!%p2246_p11), [#allocation4], %s1438_s5 }
  0x66   : > { %2042 = dma.done.wait (%p2204_p6), %s272_s29, 1024  }
  0x67   : > { %2044 = vsyncadd (%p2204_p6), %s272_s29, 4294966272  ;;  %s2539_s2 = sadd.s32 4294967295, %s2099_s25   ;;  %s2360_s28 = scalar_lea.vmem [#allocation6], %s1438_s5 }
  0x68   : > { %s280_s7 = sand.u32 1, %s2539_s2  }
  0x69   : > { %s281_s6 = scalar_lea.sflag [#allocation7], %s280_s7 }
  0x6a   : > { %2046 = dma.done.wait (%p2204_p6), %s281_s6, 1024  }
  0x6b   : > { %2048 = vsyncadd (%p2204_p6), %s281_s6, 4294966272  ;;  %s291_s26 = sand.u32 1, %s2063_s16  }
  0x6c   : > { %s1440_s8 = sshll.u32 %s291_s26, 6 }
  0x6d   : > { %s2367_s13 = scalar_lea.vmem [#allocation8], %s1440_s8 }
  0x6e   : > { %2050 = dma.done.wait (%p2288_p8), %s281_s6, 1024  }
  0x6f   : > { %2052 = vsyncadd (%p2288_p8), %s281_s6, 4294966272  ;;  %s299_s14 = scalar_lea.sflag [#allocation10], %s291_s26  ;;  %s2373_s4 = scalar_lea.vmem [#allocation9], %s1440_s8 }
  0x70   : > { %2054 = dma.done.wait (%p2288_p8), %s299_s14, 1024  }
  0x71   : > { %2056 = vsyncadd (%p2288_p8), %s299_s14, 4294966272  ;;  %s1442_s30 = sshll.u32 %s2087_s22, 4  ;;  %s2540_s12 = sld [smem:[#allocation20_spill]] }
  0x72   : > { %p347_p6 = scmp.lt.s32.totalorder %s1442_s30, 31  ;;  %s2541_s5 = sld [smem:[#allocation15_spill]] }
  0x74   : > { %s2561_s30 = smov (!%p347_p6, %s1442_s30), 31 }
  0x75   : > { %s1443_s9 = sshll.u32 %s2561_s30, 3 }
  0x77   : > { %s2383_s18 = scalar_lea.vmem %s2540_s12, %s1443_s9 }
  0x78   : > { %p1444_p11 = scmp.ne.s32.totalorder %s2541_s5, 0 }
  0x7a   : > { %356 = sbr.rel (%p1444_p11) target bundleno = 144 (0x90), region = 56 }
  0x7f   : > { %v2107_v0 = vmov 0.0  }
  0x80   : > { %357 = vst [vmem:[#allocation2 + $0x30] sm:$0xff] %v2107_v0  ;;  %358 = vst [vmem:[#allocation2] sm:$0xff] %v2107_v0 }
  0x81   : > { %359 = vst [vmem:[#allocation2 + $0x58] sm:$0xff] %v2107_v0  ;;  %360 = vst [vmem:[#allocation2 + $0x18] sm:$0xff] %v2107_v0 }
  0x82   : > { %361 = vst [vmem:[#allocation2 + $0x50] sm:$0xff] %v2107_v0  ;;  %362 = vst [vmem:[#allocation2 + $0x68] sm:$0xff] %v2107_v0 }
  0x83   : > { %363 = vst [vmem:[#allocation2 + $0x8] sm:$0xff] %v2107_v0  ;;  %364 = vst [vmem:[#allocation2 + $0x48] sm:$0xff] %v2107_v0 }
  0x84   : > { %365 = vst [vmem:[#allocation2 + $0x40] sm:$0xff] %v2107_v0  ;;  %366 = vst [vmem:[#allocation2 + $0x20] sm:$0xff] %v2107_v0 }
  0x85   : > { %367 = vst [vmem:[#allocation2 + $0x10] sm:$0xff] %v2107_v0  ;;  %368 = vst [vmem:[#allocation2 + $0x38] sm:$0xff] %v2107_v0 }
  0x86   : > { %369 = vst [vmem:[#allocation2 + $0x60] sm:$0xff] %v2107_v0  ;;  %370 = vst [vmem:[#allocation2 + $0x70] sm:$0xff] %v2107_v0 }
  0x87   : > { %371 = vst [vmem:[#allocation2 + $0x78] sm:$0xff] %v2107_v0  ;;  %372 = vst [vmem:[#allocation2 + $0x28] sm:$0xff] %v2107_v0 }
  0x88   : > { %373 = vst [vmem:[#allocation3 + $0x28] sm:$0xff] %v2107_v0  ;;  %374 = vst [vmem:[#allocation3 + $0x68] sm:$0xff] %v2107_v0 }
  0x89   : > { %375 = vst [vmem:[#allocation3 + $0x10] sm:$0xff] %v2107_v0  ;;  %376 = vst [vmem:[#allocation3 + $0x40] sm:$0xff] %v2107_v0 }
  0x8a   : > { %377 = vst [vmem:[#allocation3 + $0x48] sm:$0xff] %v2107_v0  ;;  %378 = vst [vmem:[#allocation3 + $0x30] sm:$0xff] %v2107_v0 }
  0x8b   : > { %379 = vst [vmem:[#allocation3 + $0x70] sm:$0xff] %v2107_v0  ;;  %380 = vst [vmem:[#allocation3 + $0x38] sm:$0xff] %v2107_v0 }
  0x8c   : > { %381 = vst [vmem:[#allocation3 + $0x20] sm:$0xff] %v2107_v0  ;;  %382 = vst [vmem:[#allocation3 + $0x78] sm:$0xff] %v2107_v0 }
  0x8d   : > { %383 = vst [vmem:[#allocation3 + $0x18] sm:$0xff] %v2107_v0  ;;  %384 = vst [vmem:[#allocation3 + $0x58] sm:$0xff] %v2107_v0 }
  0x8e   : > { %385 = vst [vmem:[#allocation3] sm:$0xff] %v2107_v0  ;;  %386 = vst [vmem:[#allocation3 + $0x8] sm:$0xff] %v2107_v0 }
  0x8f   : > { %387 = vst [vmem:[#allocation3 + $0x60] sm:$0xff] %v2107_v0  ;;  %388 = vst [vmem:[#allocation3 + $0x50] sm:$0xff] %v2107_v0 }
  0x90 PF: > { %v1725_v1 = vld [vmem:[%s2373_s4 + $0x38] sm:$0xff]   ;;  %v1727_v3 = vld [vmem:[%s2373_s4 + $0x30] sm:$0xff]   ;;  %v1729_v5 = vld [vmem:[%s2373_s4 + $0x28] sm:$0xff]   ;;  %s2542_s22 = sld [smem:[#allocation15_spill]] }
  0x91   : > { %v1726_v2 = vld [vmem:[%s2367_s13 + $0x38] sm:$0xff]   ;;  %1548 = vmatprep.subr.bf16.mxu0 %v1725_v1  ;;  %v1728_v4 = vld [vmem:[%s2367_s13 + $0x30] sm:$0xff]   ;;  %v1730_v6 = vld [vmem:[%s2367_s13 + $0x28] sm:$0xff]  }
  0x92   : > { %1580 = vmatprep.subr.bf16.mxu1 %v1726_v2  ;;  %1549 = vmatpush3.bf16.xpose.msra.mxu0 %v1725_v1  ;;  %v1731_v7 = vld [vmem:[%s2373_s4 + $0x20] sm:$0xff]   ;;  %v1733_v11 = vld [vmem:[%s2373_s4 + $0x18] sm:$0xff]   ;;  %v1735_v13 = vld [vmem:[%s2373_s4 + $0x10] sm:$0xff]  }
  0x93   : > { %1581 = vmatpush3.bf16.xpose.msra.mxu1 %v1726_v2  ;;  %1550 = vmatprep.subr.bf16.mxu0 %v1727_v3  ;;  %v1732_v8 = vld [vmem:[%s2367_s13 + $0x20] sm:$0xff]   ;;  %v1734_v12 = vld [vmem:[%s2367_s13 + $0x18] sm:$0xff]   ;;  %v1736_v14 = vld [vmem:[%s2367_s13 + $0x10] sm:$0xff]  }
  0x94   : > { %1582 = vmatprep.subr.bf16.mxu1 %v1728_v4  ;;  %v1741_v9 = vld [vmem:[%s2352_s11] sm:$0xff]   ;;  %v1737_v15 = vld [vmem:[%s2373_s4 + $0x8] sm:$0xff]   ;;  %v1745_v21 = vld [vmem:[%s2352_s11 + $0x10] sm:$0xff]  }
  0x95   : > { %v1742_v10 = vld [vmem:[%s2360_s28] sm:$0xff]   ;;  %1564 = vmatprep.mubr.bf16.mxu0 %v1741_v9  ;;  %v1738_v16 = vld [vmem:[%s2367_s13 + $0x8] sm:$0xff]   ;;  %v1746_v22 = vld [vmem:[%s2360_s28 + $0x10] sm:$0xff]  }
  0x96   : > { %1596 = vmatprep.mubr.bf16.mxu1 %v1742_v10  ;;  %v1739_v17 = vld [vmem:[%s2373_s4] sm:$0xff]   ;;  %v1743_v19 = vld [vmem:[%s2352_s11 + $0x8] sm:$0xff]   ;;  %v1747_v23 = vld [vmem:[%s2352_s11 + $0x18] sm:$0xff]   ;;  %p1509_p8 = scmp.ne.s32.totalorder %s2542_s22, 1 }
  0x97   : > { %v1740_v18 = vld [vmem:[%s2367_s13] sm:$0xff]   ;;  %v1744_v20 = vld [vmem:[%s2360_s28 + $0x8] sm:$0xff]   ;;  %v1748_v24 = vld [vmem:[%s2360_s28 + $0x18] sm:$0xff]  }
  0x98   : > { %v1749_v25 = vld [vmem:[%s2352_s11 + $0x20] sm:$0xff]   ;;  %v1751_v27 = vld [vmem:[%s2352_s11 + $0x28] sm:$0xff]   ;;  %v1753_v29 = vld [vmem:[%s2352_s11 + $0x30] sm:$0xff]  }
  0x99   : > { %v1750_v26 = vld [vmem:[%s2360_s28 + $0x20] sm:$0xff]   ;;  %v1752_v28 = vld [vmem:[%s2360_s28 + $0x28] sm:$0xff]   ;;  %v1754_v30 = vld [vmem:[%s2360_s28 + $0x30] sm:$0xff]  }
  0x9a   : > { %1551 = vmatpush3.bf16.xpose.msra.mxu0 %v1727_v3  ;;  %v1755_v31 = vld [vmem:[%s2352_s11 + $0x38] sm:$0xff]  }
  0x9b   : > { %1583 = vmatpush3.bf16.xpose.msra.mxu1 %v1728_v4  ;;  %1552 = vmatprep.subr.bf16.mxu0 %v1729_v5  ;;  %v1756_v32 = vld [vmem:[%s2360_s28 + $0x38] sm:$0xff]  }
  0x9c   : > { %1584 = vmatprep.subr.bf16.mxu1 %v1730_v6 }
  0xa2   : > { %1553 = vmatpush3.bf16.xpose.msra.mxu0 %v1729_v5 }
  0xa3   : > { %1585 = vmatpush3.bf16.xpose.msra.mxu1 %v1730_v6  ;;  %1554 = vmatprep.subr.bf16.mxu0 %v1731_v7 }
  0xa4   : > { %1586 = vmatprep.subr.bf16.mxu1 %v1732_v8 }
  0xaa   : > { %1555 = vmatpush3.bf16.xpose.msra.mxu0 %v1731_v7 }
  0xab   : > { %1587 = vmatpush3.bf16.xpose.msra.mxu1 %v1732_v8  ;;  %1556 = vmatprep.subr.bf16.mxu0 %v1733_v11 }
  0xac   : > { %1588 = vmatprep.subr.bf16.mxu1 %v1734_v12 }
  0xb2   : > { %1557 = vmatpush3.bf16.xpose.msra.mxu0 %v1733_v11 }
  0xb3   : > { %1589 = vmatpush3.bf16.xpose.msra.mxu1 %v1734_v12  ;;  %1558 = vmatprep.subr.bf16.mxu0 %v1735_v13 }
  0xb4   : > { %1590 = vmatprep.subr.bf16.mxu1 %v1736_v14 }
  0xba   : > { %1559 = vmatpush3.bf16.xpose.msra.mxu0 %v1735_v13  ;;  %v937_v13 = vld [vmem:[#allocation2 + $0x58] sm:$0xff] }
  0xbb   : > { %1591 = vmatpush3.bf16.xpose.msra.mxu1 %v1736_v14  ;;  %1560 = vmatprep.subr.bf16.mxu0 %v1737_v15 }
  0xbc   : > { %1592 = vmatprep.subr.bf16.mxu1 %v1738_v16 }
  0xc2   : > { %1561 = vmatpush3.bf16.xpose.msra.mxu0 %v1737_v15 }
  0xc3   : > { %1593 = vmatpush3.bf16.xpose.msra.mxu1 %v1738_v16  ;;  %1562 = vmatprep.subr.bf16.mxu0 %v1739_v17 }
  0xc4   : > { %1594 = vmatprep.subr.bf16.mxu1 %v1740_v18 }
  0xca   : > { %1563 = vmatpush3.bf16.xpose.msra.mxu0 %v1739_v17  ;;  %v985_v17 = vld [vmem:[#allocation3 + $0x10] sm:$0xff] }
  0xcb   : > { %1595 = vmatpush3.bf16.xpose.msra.mxu1 %v1740_v18 }
  0xd1   : > { %1565 = vmatmul.mubr.bf16.vlgmr.msra.gmra.mxu0 %v1743_v19 }
  0xd2   : > { %1597 = vmatmul.mubr.bf16.vlgmr.msra.gmra.mxu1 %v1744_v20  ;;  %1568 = vmatprep.mubr.bf16.mxu0 %v1745_v21 }
  0xd3   : > { %1600 = vmatprep.mubr.bf16.mxu1 %v1746_v22  ;;  %v935_v22 = vld [vmem:[#allocation2 + $0x30] sm:$0xff] }
  0xd9   : > { %1569 = vmatmul.mubr.bf16.gmra.mxu0 %v1747_v23 }
  0xda   : > { %1601 = vmatmul.mubr.bf16.gmra.mxu1 %v1748_v24  ;;  %1572 = vmatprep.mubr.bf16.mxu0 %v1749_v25 }
  0xdb   : > { %1604 = vmatprep.mubr.bf16.mxu1 %v1750_v26 }
  0xe1   : > { %1573 = vmatmul.mubr.bf16.gmra.mxu0 %v1751_v27 }
  0xe2   : > { %1605 = vmatmul.mubr.bf16.gmra.mxu1 %v1752_v28  ;;  %1576 = vmatprep.mubr.bf16.mxu0 %v1753_v29  ;;  %v983_v28 = vld [vmem:[#allocation3 + $0x28] sm:$0xff] }
  0xe3   : > { %1608 = vmatprep.mubr.bf16.mxu1 %v1754_v30 }
  0xe9   : > { %1577 = vmatmul.mubr.bf16.gmra.mxu0 %v1755_v31 }
  0xea   : > { %1609 = vmatmul.mubr.bf16.gmra.mxu1 %v1756_v32 }
 0x191   : > { %v1566_v33 = vpop.f32.mrf.mxu0 }
 0x192   : > { %v1479_v34 = vadd.f32 -14.285714, %v1566_v33  ;;  %v1598_v35 = vpop.f32.mrf.mxu1 }
 0x193   : > { %v1495_v36 = vadd.f32 -14.285714, %v1598_v35  ;;  %v583_v37 = vpop.f32.mrf.mxu0 }
 0x194   : > { %v859_v38 = vmul.f32 1.442695, %v1479_v34  ;;  %v1477_v39 = vadd.f32 -14.285714, %v583_v37  ;;  %v776_v40 = vpop.f32.mrf.mxu1  ;;  %v938_v34 = vld [vmem:[#allocation2 + $0x18] sm:$0xff] }
 0x195   : > { %v907_v41 = vmul.f32 1.442695, %v1495_v36  ;;  %v1493_v42 = vadd.f32 -14.285714, %v776_v40  ;;  %v1567_v43 = vpop.f32.mrf.mxu0  ;;  %v986_v40 = vld [vmem:[#allocation3 + $0x40] sm:$0xff] }
 0x196   : > { %1757 = vpow2.f32 %v859_v38  ;;  %v855_v44 = vmul.f32 1.442695, %v1477_v39  ;;  %v1480_v45 = vadd.f32 -14.285714, %v1567_v43  ;;  %v1599_v46 = vpop.f32.mrf.mxu1 }
 0x197   : > { %1759 = vpow2.f32 %v907_v41  ;;  %v903_v47 = vmul.f32 1.442695, %v1493_v42  ;;  %v1496_v48 = vadd.f32 -14.285714, %v1599_v46  ;;  %v586_v49 = vpop.f32.mrf.mxu0  ;;  %v936_v46 = vld [vmem:[#allocation2] sm:$0xff] }
 0x198   : > { %1761 = vpow2.f32 %v855_v44  ;;  %v861_v50 = vmul.f32 1.442695, %v1480_v45  ;;  %v1478_v51 = vadd.f32 -14.285714, %v586_v49  ;;  %v779_v52 = vpop.f32.mrf.mxu1 }
 0x199   : > { %1763 = vpow2.f32 %v903_v47  ;;  %v909_v53 = vmul.f32 1.442695, %v1496_v48  ;;  %v1494_v54 = vadd.f32 -14.285714, %v779_v52  ;;  %v1570_v55 = vpop.f32.mrf.mxu0  ;;  %v984_v52 = vld [vmem:[#allocation3 + $0x68] sm:$0xff] }
 0x19a   : > { %1765 = vpow2.f32 %v861_v50  ;;  %v857_v56 = vmul.f32 1.442695, %v1478_v51  ;;  %v1483_v57 = vadd.f32 -14.285714, %v1570_v55  ;;  %v1602_v58 = vpop.f32.mrf.mxu1 }
 0x19b   : > { %1767 = vpow2.f32 %v909_v53  ;;  %v905_v59 = vmul.f32 1.442695, %v1494_v54  ;;  %v1499_v60 = vadd.f32 -14.285714, %v1602_v58  ;;  %v599_v61 = vpop.f32.mrf.mxu0  ;;  %v941_v58 = vld [vmem:[#allocation2 + $0x8] sm:$0xff] }
 0x19c   : > { %1769 = vpow2.f32 %v857_v56  ;;  %v867_v62 = vmul.f32 1.442695, %v1483_v57  ;;  %v1481_v63 = vadd.f32 -14.285714, %v599_v61  ;;  %v792_v0 = vpop.f32.mrf.mxu1 }
 0x19d   : > { %1771 = vpow2.f32 %v905_v59  ;;  %v915_v1 = vmul.f32 1.442695, %v1499_v60  ;;  %v1497_v2 = vadd.f32 -14.285714, %v792_v0  ;;  %v1571_v3 = vpop.f32.mrf.mxu0  ;;  %v989_v0 = vld [vmem:[#allocation3 + $0x70] sm:$0xff] }
 0x19e   : > { %1773 = vpow2.f32 %v867_v62  ;;  %v863_v4 = vmul.f32 1.442695, %v1481_v63  ;;  %v1484_v5 = vadd.f32 -14.285714, %v1571_v3  ;;  %v1603_v6 = vpop.f32.mrf.mxu1 }
 0x19f   : > { %1775 = vpow2.f32 %v915_v1  ;;  %v911_v7 = vmul.f32 1.442695, %v1497_v2  ;;  %v1500_v8 = vadd.f32 -14.285714, %v1603_v6  ;;  %v602_v9 = vpop.f32.mrf.mxu0  ;;  %v939_v6 = vld [vmem:[#allocation2 + $0x50] sm:$0xff] }
 0x1a0   : > { %1777 = vpow2.f32 %v863_v4  ;;  %v869_v10 = vmul.f32 1.442695, %v1484_v5  ;;  %v1482_v11 = vadd.f32 -14.285714, %v602_v9  ;;  %v795_v12 = vpop.f32.mrf.mxu1 }
 0x1a1   : > { %1779 = vpow2.f32 %v911_v7  ;;  %v917_v14 = vmul.f32 1.442695, %v1500_v8  ;;  %v1498_v15 = vadd.f32 -14.285714, %v795_v12  ;;  %v1574_v16 = vpop.f32.mrf.mxu0  ;;  %v987_v12 = vld [vmem:[#allocation3 + $0x48] sm:$0xff] }
 0x1a2   : > { %1781 = vpow2.f32 %v869_v10  ;;  %v865_v18 = vmul.f32 1.442695, %v1482_v11  ;;  %v1487_v19 = vadd.f32 -14.285714, %v1574_v16  ;;  %v1606_v20 = vpop.f32.mrf.mxu1 }
 0x1a3   : > { %v1758_v21 = vpop.eup %1757  ;;  %1783 = vpow2.f32 %v917_v14  ;;  %v913_v23 = vmul.f32 1.442695, %v1498_v15  ;;  %v1503_v24 = vadd.f32 -14.285714, %v1606_v20  ;;  %v615_v25 = vpop.f32.mrf.mxu0 }
 0x1a4   : > { %v1760_v26 = vpop.eup %1759  ;;  %v953_v27 = vadd.f32 %v1758_v21, %v937_v13  ;;  %1785 = vpow2.f32 %v865_v18  ;;  %v875_v29 = vmul.f32 1.442695, %v1487_v19  ;;  %v1485_v30 = vadd.f32 -14.285714, %v615_v25  ;;  %v808_v31 = vpop.f32.mrf.mxu1  ;;  %v942_v18 = vld [vmem:[#allocation2 + $0x48] sm:$0xff] }
 0x1a5   : > { %v1762_v32 = vpop.eup %1761  ;;  %v1001_v33 = vadd.f32 %v1760_v26, %v985_v17  ;;  %1787 = vpow2.f32 %v913_v23  ;;  %v923_v35 = vmul.f32 1.442695, %v1503_v24  ;;  %v1501_v36 = vadd.f32 -14.285714, %v808_v31  ;;  %v1575_v37 = vpop.f32.mrf.mxu0  ;;  %v990_v24 = vld [vmem:[#allocation3 + $0x38] sm:$0xff] }
 0x1a6   : > { %v1764_v38 = vpop.eup %1763  ;;  %969 = vst [vmem:[#allocation2 + $0x58] sm:$0xff] %v953_v27  ;;  %v951_v39 = vadd.f32 %v1762_v32, %v935_v22  ;;  %1789 = vpow2.f32 %v875_v29  ;;  %v871_v41 = vmul.f32 1.442695, %v1485_v30  ;;  %v1488_v42 = vadd.f32 -14.285714, %v1575_v37  ;;  %v1607_v43 = vpop.f32.mrf.mxu1  ;;  %v940_v30 = vld [vmem:[#allocation2 + $0x68] sm:$0xff] }
 0x1a7   : > { %v1766_v44 = vpop.eup %1765  ;;  %1017 = vst [vmem:[#allocation3 + $0x10] sm:$0xff] %v1001_v33  ;;  %v999_v45 = vadd.f32 %v1764_v38, %v983_v28  ;;  %1791 = vpow2.f32 %v923_v35  ;;  %v919_v47 = vmul.f32 1.442695, %v1501_v36  ;;  %v1504_v48 = vadd.f32 -14.285714, %v1607_v43  ;;  %v618_v49 = vpop.f32.mrf.mxu0  ;;  %v988_v36 = vld [vmem:[#allocation3 + $0x30] sm:$0xff] }
 0x1a8   : > { %v1768_v50 = vpop.eup %1767  ;;  %967 = vst [vmem:[#allocation2 + $0x30] sm:$0xff] %v951_v39  ;;  %v954_v51 = vadd.f32 %v1766_v44, %v938_v34  ;;  %1793 = vpow2.f32 %v871_v41  ;;  %v877_v53 = vmul.f32 1.442695, %v1488_v42  ;;  %v1486_v54 = vadd.f32 -14.285714, %v618_v49  ;;  %v811_v55 = vpop.f32.mrf.mxu1  ;;  %v945_v42 = vld [vmem:[#allocation2 + $0x10] sm:$0xff] }
 0x1a9   : > { %v1770_v56 = vpop.eup %1769  ;;  %1015 = vst [vmem:[#allocation3 + $0x28] sm:$0xff] %v999_v45  ;;  %v1002_v57 = vadd.f32 %v1768_v50, %v986_v40  ;;  %1795 = vpow2.f32 %v919_v47  ;;  %v925_v59 = vmul.f32 1.442695, %v1504_v48  ;;  %v1502_v60 = vadd.f32 -14.285714, %v811_v55  ;;  %v1578_v61 = vpop.f32.mrf.mxu0  ;;  %v993_v47 = vld [vmem:[#allocation3 + $0x18] sm:$0xff] }
 0x1aa   : > { %v1772_v62 = vpop.eup %1771  ;;  %970 = vst [vmem:[#allocation2 + $0x18] sm:$0xff] %v954_v51  ;;  %v952_v63 = vadd.f32 %v1770_v56, %v936_v46  ;;  %1797 = vpow2.f32 %v877_v53  ;;  %v873_v1 = vmul.f32 1.442695, %v1486_v54  ;;  %v1491_v2 = vadd.f32 -14.285714, %v1578_v61  ;;  %v1610_v3 = vpop.f32.mrf.mxu1  ;;  %v943_v51 = vld [vmem:[#allocation2 + $0x40] sm:$0xff] }
 0x1ab   : > { %v1774_v4 = vpop.eup %1773  ;;  %1018 = vst [vmem:[#allocation3 + $0x40] sm:$0xff] %v1002_v57  ;;  %v1000_v5 = vadd.f32 %v1772_v62, %v984_v52  ;;  %1799 = vpow2.f32 %v925_v59  ;;  %v921_v7 = vmul.f32 1.442695, %v1502_v60  ;;  %v1507_v8 = vadd.f32 -14.285714, %v1610_v3  ;;  %v631_v9 = vpop.f32.mrf.mxu0  ;;  %v991_v55 = vld [vmem:[#allocation3 + $0x20] sm:$0xff] }
 0x1ac   : > { %v1776_v10 = vpop.eup %1775  ;;  %968 = vst [vmem:[#allocation2] sm:$0xff] %v952_v63  ;;  %v957_v11 = vadd.f32 %v1774_v4, %v941_v58  ;;  %1801 = vpow2.f32 %v873_v1  ;;  %v883_v13 = vmul.f32 1.442695, %v1491_v2  ;;  %v1489_v14 = vadd.f32 -14.285714, %v631_v9  ;;  %v824_v15 = vpop.f32.mrf.mxu1  ;;  %v946_v58 = vld [vmem:[#allocation2 + $0x38] sm:$0xff] }
 0x1ad   : > { %v1778_v16 = vpop.eup %1777  ;;  %1016 = vst [vmem:[#allocation3 + $0x68] sm:$0xff] %v1000_v5  ;;  %v1005_v17 = vadd.f32 %v1776_v10, %v989_v0  ;;  %1803 = vpow2.f32 %v921_v7  ;;  %v931_v19 = vmul.f32 1.442695, %v1507_v8  ;;  %v1505_v20 = vadd.f32 -14.285714, %v824_v15  ;;  %v1579_v21 = vpop.f32.mrf.mxu0  ;;  %v994_v61 = vld [vmem:[#allocation3 + $0x58] sm:$0xff] }
 0x1ae   : > { %v1780_v22 = vpop.eup %1779  ;;  %973 = vst [vmem:[#allocation2 + $0x8] sm:$0xff] %v957_v11  ;;  %v955_v23 = vadd.f32 %v1778_v16, %v939_v6  ;;  %1805 = vpow2.f32 %v883_v13  ;;  %v879_v25 = vmul.f32 1.442695, %v1489_v14  ;;  %v1492_v26 = vadd.f32 -14.285714, %v1579_v21  ;;  %v1611_v27 = vpop.f32.mrf.mxu1  ;;  %v944_v0 = vld [vmem:[#allocation2 + $0x20] sm:$0xff] }
 0x1af   : > { %v1782_v28 = vpop.eup %1781  ;;  %1021 = vst [vmem:[#allocation3 + $0x70] sm:$0xff] %v1005_v17  ;;  %v1003_v29 = vadd.f32 %v1780_v22, %v987_v12  ;;  %1807 = vpow2.f32 %v931_v19  ;;  %v927_v31 = vmul.f32 1.442695, %v1505_v20  ;;  %v1508_v32 = vadd.f32 -14.285714, %v1611_v27  ;;  %v634_v33 = vpop.f32.mrf.mxu0  ;;  %v992_v3 = vld [vmem:[#allocation3 + $0x78] sm:$0xff] }
 0x1b0   : > { %v1784_v34 = vpop.eup %1783  ;;  %971 = vst [vmem:[#allocation2 + $0x50] sm:$0xff] %v955_v23  ;;  %v958_v35 = vadd.f32 %v1782_v28, %v942_v18  ;;  %1809 = vpow2.f32 %v879_v25  ;;  %v885_v37 = vmul.f32 1.442695, %v1492_v26  ;;  %v1490_v38 = vadd.f32 -14.285714, %v634_v33  ;;  %v827_v39 = vpop.f32.mrf.mxu1  ;;  %v949_v6 = vld [vmem:[#allocation2 + $0x78] sm:$0xff] }
 0x1b1   : > { %v1786_v40 = vpop.eup %1785  ;;  %1019 = vst [vmem:[#allocation3 + $0x48] sm:$0xff] %v1003_v29  ;;  %v1006_v41 = vadd.f32 %v1784_v34, %v990_v24  ;;  %1811 = vpow2.f32 %v927_v31  ;;  %v933_v43 = vmul.f32 1.442695, %v1508_v32  ;;  %v1506_v44 = vadd.f32 -14.285714, %v827_v39  ;;  %v997_v9 = vld [vmem:[#allocation3 + $0x60] sm:$0xff] }
 0x1b2   : > { %v1788_v45 = vpop.eup %1787  ;;  %974 = vst [vmem:[#allocation2 + $0x48] sm:$0xff] %v958_v35  ;;  %v956_v46 = vadd.f32 %v1786_v40, %v940_v30  ;;  %1813 = vpow2.f32 %v885_v37  ;;  %v881_v48 = vmul.f32 1.442695, %v1490_v38  ;;  %v947_v12 = vld [vmem:[#allocation2 + $0x60] sm:$0xff]  ;;  %v950_v18 = vld [vmem:[#allocation2 + $0x28] sm:$0xff]  ;;  %v998_v21 = vld [vmem:[#allocation3 + $0x50] sm:$0xff] }
 0x1b3   : > { %v1790_v49 = vpop.eup %1789  ;;  %1022 = vst [vmem:[#allocation3 + $0x38] sm:$0xff] %v1006_v41  ;;  %v1004_v50 = vadd.f32 %v1788_v45, %v988_v36  ;;  %1815 = vpow2.f32 %v933_v43  ;;  %v929_v52 = vmul.f32 1.442695, %v1506_v44  ;;  %v995_v15 = vld [vmem:[#allocation3] sm:$0xff]  ;;  %v948_v24 = vld [vmem:[#allocation2 + $0x70] sm:$0xff]  ;;  %v996_v27 = vld [vmem:[#allocation3 + $0x8] sm:$0xff] }
 0x1b4   : > { %v1792_v53 = vpop.eup %1791  ;;  %972 = vst [vmem:[#allocation2 + $0x68] sm:$0xff] %v956_v46  ;;  %v961_v54 = vadd.f32 %v1790_v49, %v945_v42  ;;  %1817 = vpow2.f32 %v881_v48 }
 0x1b5   : > { %v1794_v56 = vpop.eup %1793  ;;  %1020 = vst [vmem:[#allocation3 + $0x30] sm:$0xff] %v1004_v50  ;;  %v1009_v57 = vadd.f32 %v1792_v53, %v993_v47  ;;  %1819 = vpow2.f32 %v929_v52 }
 0x1b6   : > { %v1796_v59 = vpop.eup %1795  ;;  %977 = vst [vmem:[#allocation2 + $0x10] sm:$0xff] %v961_v54  ;;  %v959_v60 = vadd.f32 %v1794_v56, %v943_v51 }
 0x1b7   : > { %v1798_v62 = vpop.eup %1797  ;;  %1025 = vst [vmem:[#allocation3 + $0x18] sm:$0xff] %v1009_v57  ;;  %v1007_v63 = vadd.f32 %v1796_v59, %v991_v55 }
 0x1b8   : > { %v1800_v1 = vpop.eup %1799  ;;  %975 = vst [vmem:[#allocation2 + $0x40] sm:$0xff] %v959_v60  ;;  %v962_v2 = vadd.f32 %v1798_v62, %v946_v58 }
 0x1b9   : > { %v1802_v4 = vpop.eup %1801  ;;  %1023 = vst [vmem:[#allocation3 + $0x20] sm:$0xff] %v1007_v63  ;;  %v1010_v5 = vadd.f32 %v1800_v1, %v994_v61 }
 0x1ba   : > { %v1804_v7 = vpop.eup %1803  ;;  %978 = vst [vmem:[#allocation2 + $0x38] sm:$0xff] %v962_v2  ;;  %v960_v8 = vadd.f32 %v1802_v4, %v944_v0 }
 0x1bb   : > { %v1806_v10 = vpop.eup %1805  ;;  %1026 = vst [vmem:[#allocation3 + $0x58] sm:$0xff] %v1010_v5  ;;  %v1008_v11 = vadd.f32 %v1804_v7, %v992_v3 }
 0x1bc   : > { %v1808_v13 = vpop.eup %1807  ;;  %976 = vst [vmem:[#allocation2 + $0x20] sm:$0xff] %v960_v8  ;;  %v965_v14 = vadd.f32 %v1806_v10, %v949_v6 }
 0x1bd   : > { %v1810_v16 = vpop.eup %1809  ;;  %1024 = vst [vmem:[#allocation3 + $0x78] sm:$0xff] %v1008_v11  ;;  %v1013_v17 = vadd.f32 %v1808_v13, %v997_v9 }
 0x1be   : > { %v1812_v19 = vpop.eup %1811  ;;  %981 = vst [vmem:[#allocation2 + $0x78] sm:$0xff] %v965_v14  ;;  %v963_v20 = vadd.f32 %v1810_v16, %v947_v12 }
 0x1bf   : > { %v1814_v22 = vpop.eup %1813  ;;  %1029 = vst [vmem:[#allocation3 + $0x60] sm:$0xff] %v1013_v17  ;;  %v1011_v23 = vadd.f32 %v1812_v19, %v995_v15 }
 0x1c0   : > { %v1816_v25 = vpop.eup %1815  ;;  %979 = vst [vmem:[#allocation2 + $0x60] sm:$0xff] %v963_v20  ;;  %v966_v26 = vadd.f32 %v1814_v22, %v950_v18 }
 0x1c1   : > { %v1818_v28 = vpop.eup %1817  ;;  %1027 = vst [vmem:[#allocation3] sm:$0xff] %v1011_v23  ;;  %v1014_v29 = vadd.f32 %v1816_v25, %v998_v21  ;;  %1034 = sbr.rel (%p1509_p8) target bundleno = 675 (0x2a3), region = 60 }
 0x1c2   : > { %v1820_v30 = vpop.eup %1819  ;;  %982 = vst [vmem:[#allocation2 + $0x28] sm:$0xff] %v966_v26  ;;  %v964_v31 = vadd.f32 %v1818_v28, %v948_v24 }
 0x1c3   : > { %1030 = vst [vmem:[#allocation3 + $0x50] sm:$0xff] %v1014_v29  ;;  %v1012_v32 = vadd.f32 %v1820_v30, %v996_v27 }
 0x1c4   : > { %980 = vst [vmem:[#allocation2 + $0x70] sm:$0xff] %v964_v31 }
 0x1c5   : > { %1028 = vst [vmem:[#allocation3 + $0x8] sm:$0xff] %v1012_v32 }
 0x1c6   : > { %v1037_v33 = vld [vmem:[#allocation2 + $0x58] sm:$0xff]  ;;  %v1035_v34 = vld [vmem:[#allocation2 + $0x30] sm:$0xff]  ;;  %v1036_v36 = vld [vmem:[#allocation2] sm:$0xff]  ;;  %vm1259_vm0 = vcmask 7168  }
 0x1c7   : > { %1055 = vadd.xlane.f32.xlu1 %v1037_v33  ;;  %1051 = vadd.xlane.f32.xlu0 %v1035_v34  ;;  %v1038_v35 = vld [vmem:[#allocation2 + $0x18] sm:$0xff]  ;;  %v1040_v37 = vld [vmem:[#allocation2 + $0x68] sm:$0xff]  ;;  %v1039_v38 = vld [vmem:[#allocation2 + $0x50] sm:$0xff] }
 0x1c8   : > { %v1042_v39 = vld [vmem:[#allocation2 + $0x48] sm:$0xff]  ;;  %v1044_v41 = vld [vmem:[#allocation2 + $0x20] sm:$0xff]  ;;  %v1046_v43 = vld [vmem:[#allocation2 + $0x38] sm:$0xff] }
 0x1c9   : > { %v1041_v40 = vld [vmem:[#allocation2 + $0x8] sm:$0xff]  ;;  %v1043_v42 = vld [vmem:[#allocation2 + $0x40] sm:$0xff]  ;;  %v1045_v44 = vld [vmem:[#allocation2 + $0x10] sm:$0xff] }
 0x1ca   : > { %v1047_v46 = vld [vmem:[#allocation2 + $0x60] sm:$0xff]  ;;  %v1050_v47 = vld [vmem:[#allocation2 + $0x28] sm:$0xff]  ;;  %v1049_v48 = vld [vmem:[#allocation2 + $0x78] sm:$0xff] }
 0x1cb   : > { %1057 = vadd.xlane.f32.xlu1 %v1038_v35  ;;  %1053 = vadd.xlane.f32.xlu0 %v1036_v36  ;;  %v1048_v45 = vld [vmem:[#allocation2 + $0x70] sm:$0xff]  ;;  %v1084_v49 = vld [vmem:[#allocation3 + $0x68] sm:$0xff]  ;;  %v1086_v51 = vld [vmem:[#allocation3 + $0x40] sm:$0xff] }
 0x1cc   : > { %v1083_v50 = vld [vmem:[#allocation3 + $0x28] sm:$0xff]  ;;  %v1085_v52 = vld [vmem:[#allocation3 + $0x10] sm:$0xff]  ;;  %v1090_v55 = vld [vmem:[#allocation3 + $0x38] sm:$0xff] }
 0x1cd   : > { %v1088_v53 = vld [vmem:[#allocation3 + $0x30] sm:$0xff]  ;;  %v1087_v54 = vld [vmem:[#allocation3 + $0x48] sm:$0xff]  ;;  %v1092_v57 = vld [vmem:[#allocation3 + $0x78] sm:$0xff] }
 0x1ce   : > { %v1089_v56 = vld [vmem:[#allocation3 + $0x70] sm:$0xff]  ;;  %v1091_v58 = vld [vmem:[#allocation3 + $0x20] sm:$0xff]  ;;  %v1094_v59 = vld [vmem:[#allocation3 + $0x58] sm:$0xff] }
 0x1cf   : > { %1061 = vadd.xlane.f32.xlu1 %v1040_v37  ;;  %1059 = vadd.xlane.f32.xlu0 %v1039_v38  ;;  %v1093_v60 = vld [vmem:[#allocation3 + $0x18] sm:$0xff]  ;;  %v1096_v61 = vld [vmem:[#allocation3 + $0x8] sm:$0xff]  ;;  %v1095_v62 = vld [vmem:[#allocation3] sm:$0xff] }
 0x1d0   : > { %v1098_v63 = vld [vmem:[#allocation3 + $0x50] sm:$0xff]  ;;  %v1097_v0 = vld [vmem:[#allocation3 + $0x60] sm:$0xff] }
 0x1d3   : > { %1065 = vadd.xlane.f32.xlu1 %v1042_v39  ;;  %1063 = vadd.xlane.f32.xlu0 %v1041_v40 }
 0x1d7   : > { %1069 = vadd.xlane.f32.xlu1 %v1044_v41  ;;  %1067 = vadd.xlane.f32.xlu0 %v1043_v42 }
 0x1db   : > { %1073 = vadd.xlane.f32.xlu1 %v1046_v43  ;;  %1071 = vadd.xlane.f32.xlu0 %v1045_v44 }
 0x1df   : > { %1077 = vadd.xlane.f32.xlu1 %v1048_v45  ;;  %1075 = vadd.xlane.f32.xlu0 %v1047_v46 }
 0x1e3   : > { %1081 = vadd.xlane.f32.xlu1 %v1050_v47  ;;  %1079 = vadd.xlane.f32.xlu0 %v1049_v48 }
 0x1e7   : > { %1101 = vadd.xlane.f32.xlu1 %v1084_v49  ;;  %1099 = vadd.xlane.f32.xlu0 %v1083_v50 }
 0x1eb   : > { %1105 = vadd.xlane.f32.xlu1 %v1086_v51  ;;  %1103 = vadd.xlane.f32.xlu0 %v1085_v52 }
 0x1ef   : > { %1109 = vadd.xlane.f32.xlu1 %v1088_v53  ;;  %1107 = vadd.xlane.f32.xlu0 %v1087_v54 }
 0x1f3   : > { %1113 = vadd.xlane.f32.xlu1 %v1090_v55  ;;  %1111 = vadd.xlane.f32.xlu0 %v1089_v56 }
 0x1f7   : > { %1117 = vadd.xlane.f32.xlu1 %v1092_v57  ;;  %1115 = vadd.xlane.f32.xlu0 %v1091_v58 }
 0x1fb   : > { %1121 = vadd.xlane.f32.xlu1 %v1094_v59  ;;  %1119 = vadd.xlane.f32.xlu0 %v1093_v60 }
 0x1ff   : > { %1125 = vadd.xlane.f32.xlu1 %v1096_v61  ;;  %1123 = vadd.xlane.f32.xlu0 %v1095_v62 }
 0x203   : > { %1129 = vadd.xlane.f32.xlu1 %v1098_v63  ;;  %1127 = vadd.xlane.f32.xlu0 %v1097_v0 }
 0x250   : > { %v1056_v1 = vpop.xlane.xlu1 %1055  ;;  %v1052_v2 = vpop.xlane.xlu0 %1051 }
 0x251   : > { %v1133_v16 = vmax.f32 %v1056_v1, 1e-30  ;;  %v1131_v17 = vmax.f32 %v1052_v2, 1e-30 }
 0x254   : > { %v1058_v3 = vpop.xlane.xlu1 %1057  ;;  %v1054_v4 = vpop.xlane.xlu0 %1053 }
 0x255   : > { %v1132_v13 = vmax.f32 %v1054_v4, 1e-30  ;;  %v1134_v18 = vmax.f32 %v1058_v3, 1e-30 }
 0x257   : > { %1821 = vlog2.f32 %v1132_v13 }
 0x258   : > { %v1062_v5 = vpop.xlane.xlu1 %1061  ;;  %v1060_v6 = vpop.xlane.xlu0 %1059  ;;  %1823 = vlog2.f32 %v1133_v16 }
 0x259   : > { %1825 = vlog2.f32 %v1131_v17  ;;  %v1136_v21 = vmax.f32 %v1062_v5, 1e-30  ;;  %v1135_v24 = vmax.f32 %v1060_v6, 1e-30 }
 0x25a   : > { %1827 = vlog2.f32 %v1134_v18 }
 0x25b   : > { %1829 = vlog2.f32 %v1136_v21 }
 0x25c   : > { %v1066_v7 = vpop.xlane.xlu1 %1065  ;;  %v1064_v8 = vpop.xlane.xlu0 %1063 }
 0x25d   : > { %v1138_v27 = vmax.f32 %v1066_v7, 1e-30  ;;  %v1137_v30 = vmax.f32 %v1064_v8, 1e-30 }
 0x260   : > { %v1070_v9 = vpop.xlane.xlu1 %1069  ;;  %v1068_v10 = vpop.xlane.xlu0 %1067 }
 0x261   : > { %v1140_v33 = vmax.f32 %v1070_v9, 1e-30  ;;  %v1139_v40 = vmax.f32 %v1068_v10, 1e-30 }
 0x264   : > { %v2419_v11 = vpop.xlane.xlu1 %1073  ;;  %v2421_v12 = vpop.xlane.xlu0 %1071 }
 0x265   : > { %v1822_v36 = vpop.eup %1821  ;;  %v1142_v46 = vmax.f32 %v2419_v11, 1e-30  ;;  %v1141_v50 = vmax.f32 %v2421_v12, 1e-30 }
 0x266   : > { %v1824_v39 = vpop.eup %1823  ;;  %v1166_v43 = vmul.f32 0.6931472, %v1822_v36 }
 0x267   : > { %v1826_v41 = vpop.eup %1825  ;;  %v1168_v52 = vmul.f32 0.6931472, %v1824_v39 }
 0x268   : > { %v2423_v14 = vpop.xlane.xlu1 %1077  ;;  %v2425_v15 = vpop.xlane.xlu0 %1075  ;;  %v1164_v49 = vmul.f32 0.6931472, %v1826_v41  ;;  %v1196_v55 = vadd.f32 28.571428, %v1166_v43 }
 0x269   : > { %v1828_v42 = vpop.eup %1827  ;;  %v1144_v56 = vmax.f32 %v2423_v14, 1e-30  ;;  %v1143_v1 = vmax.f32 %v2425_v15, 1e-30  ;;  %v1197_v4 = vadd.f32 28.571428, %v1168_v52 }
 0x26a   : > { %v1830_v51 = vpop.eup %1829  ;;  %v1170_v53 = vmul.f32 0.6931472, %v1828_v42  ;;  %v1195_v0 = vadd.f32 28.571428, %v1164_v49 }
 0x26b   : > { %v1174_v8 = vmul.f32 0.6931472, %v1830_v51 }
 0x26c   : > { %v2427_v19 = vpop.xlane.xlu1 %1081  ;;  %v2429_v20 = vpop.xlane.xlu0 %1079  ;;  %v1198_v5 = vadd.f32 28.571428, %v1170_v53 }
 0x26d   : > { %v1146_v9 = vmax.f32 %v2427_v19, 1e-30  ;;  %v1145_v21 = vmax.f32 %v2429_v20, 1e-30 }
 0x270   : > { %v1102_v22 = vpop.xlane.xlu1 %1101  ;;  %v1100_v23 = vpop.xlane.xlu0 %1099 }
 0x271   : > { %v1148_v25 = vmax.f32 %v1102_v22, 1e-30  ;;  %v1147_v26 = vmax.f32 %v1100_v23, 1e-30 }
 0x273   : > { %1831 = vlog2.f32 %v1148_v25  ;;  %v1200_v25 = vadd.f32 28.571428, %v1174_v8 }
 0x274   : > { %1833 = vlog2.f32 %v1147_v26  ;;  %v1106_v28 = vpop.xlane.xlu1 %1105  ;;  %v1104_v29 = vpop.xlane.xlu0 %1103 }
 0x275   : > { %1835 = vlog2.f32 %v1135_v24  ;;  %v1150_v31 = vmax.f32 %v1106_v28, 1e-30  ;;  %v1149_v32 = vmax.f32 %v1104_v29, 1e-30 }
 0x276   : > { %1837 = vlog2.f32 %v1138_v27 }
 0x277   : > { %1839 = vlog2.f32 %v1150_v31 }
 0x278   : > { %1841 = vlog2.f32 %v1149_v32  ;;  %v1110_v34 = vpop.xlane.xlu1 %1109  ;;  %v1108_v35 = vpop.xlane.xlu0 %1107 }
 0x279   : > { %1843 = vlog2.f32 %v1137_v30  ;;  %v1152_v37 = vmax.f32 %v1110_v34, 1e-30  ;;  %v1151_v38 = vmax.f32 %v1108_v35, 1e-30 }
 0x27a   : > { %1845 = vlog2.f32 %v1140_v33 }
 0x27b   : > { %1847 = vlog2.f32 %v1152_v37 }
 0x27c   : > { %1849 = vlog2.f32 %v1151_v38  ;;  %v1114_v44 = vpop.xlane.xlu1 %1113  ;;  %v1112_v45 = vpop.xlane.xlu0 %1111 }
 0x27d   : > { %v1154_v47 = vmax.f32 %v1114_v44, 1e-30  ;;  %v1153_v48 = vmax.f32 %v1112_v45, 1e-30  ;;  %1851 = vlog2.f32 %v1139_v40 }
 0x27f   : > { %1853 = vlog2.f32 %v1154_v47 }
 0x280   : > { %v1832_v54 = vpop.eup %1831  ;;  %1855 = vlog2.f32 %v1153_v48  ;;  %v1118_v57 = vpop.xlane.xlu1 %1117 }
 0x281   : > { %v1116_v58 = vpop.xlane.xlu0 %1115  ;;  %v1834_v59 = vpop.eup %1833  ;;  %1857 = vlog2.f32 %v1142_v46  ;;  %v1214_v60 = vmul.f32 0.6931472, %v1832_v54  ;;  %v1156_v61 = vmax.f32 %v1118_v57, 1e-30 }
 0x282   : > { %v1155_v62 = vmax.f32 %v1116_v58, 1e-30  ;;  %v1836_v63 = vpop.eup %1835  ;;  %1859 = vlog2.f32 %v1141_v50  ;;  %v1212_v2 = vmul.f32 0.6931472, %v1834_v59 }
 0x283   : > { %v1838_v3 = vpop.eup %1837  ;;  %v1244_v6 = vadd.f32 %v1214_v60, %v1196_v55  ;;  %1861 = vlog2.f32 %v1156_v61  ;;  %v1172_v18 = vmul.f32 0.6931472, %v1836_v63 }
 0x284   : > { %v1840_v7 = vpop.eup %1839  ;;  %v1243_v10 = vadd.f32 %v1212_v2, %v1195_v0  ;;  %1863 = vlog2.f32 %v1155_v62  ;;  %v1122_v11 = vpop.xlane.xlu1 %1121  ;;  %v1178_v26 = vmul.f32 0.6931472, %v1838_v3 }
 0x285   : > { %v1120_v12 = vpop.xlane.xlu0 %1119  ;;  %v1842_v13 = vpop.eup %1841  ;;  %1865 = vlog2.f32 %v1144_v56  ;;  %1261 = vst.msk [vmem:[%s2383_s18 + $0x8] sm:$0xff] %vm1259_vm0, %v1244_v6  ;;  %v1218_v14 = vmul.f32 0.6931472, %v1840_v7  ;;  %v1158_v15 = vmax.f32 %v1122_v11, 1e-30 }
 0x286   : > { %v1157_v16 = vmax.f32 %v1120_v12, 1e-30  ;;  %v1844_v17 = vpop.eup %1843  ;;  %1867 = vlog2.f32 %v1143_v1  ;;  %1260 = vst.msk [vmem:[%s2383_s18] sm:$0xff] %vm1259_vm0, %v1243_v10  ;;  %v1216_v19 = vmul.f32 0.6931472, %v1842_v13 }
 0x287   : > { %v1846_v22 = vpop.eup %1845  ;;  %v1246_v23 = vadd.f32 %v1218_v14, %v1198_v5  ;;  %1869 = vlog2.f32 %v1158_v15  ;;  %v1199_v33 = vadd.f32 28.571428, %v1172_v18  ;;  %v1176_v34 = vmul.f32 0.6931472, %v1844_v17 }
 0x288   : > { %v1848_v24 = vpop.eup %1847  ;;  %v1245_v27 = vadd.f32 %v1216_v19, %v1197_v4  ;;  %1871 = vlog2.f32 %v1157_v16  ;;  %v1126_v28 = vpop.xlane.xlu1 %1125  ;;  %v1202_v39 = vadd.f32 28.571428, %v1178_v26  ;;  %v1182_v40 = vmul.f32 0.6931472, %v1846_v22 }
 0x289   : > { %v1124_v29 = vpop.xlane.xlu0 %1123  ;;  %v1850_v30 = vpop.eup %1849  ;;  %1873 = vlog2.f32 %v1146_v9  ;;  %1263 = vst.msk [vmem:[%s2383_s18 + $0x18] sm:$0xff] %vm1259_vm0, %v1246_v23  ;;  %v1222_v31 = vmul.f32 0.6931472, %v1848_v24  ;;  %v1160_v20 = vmax.f32 %v1126_v28, 1e-30 }
 0x28a   : > { %v1159_v32 = vmax.f32 %v1124_v29, 1e-30  ;;  %1875 = vlog2.f32 %v1145_v21  ;;  %1262 = vst.msk [vmem:[%s2383_s18 + $0x10] sm:$0xff] %vm1259_vm0, %v1245_v27  ;;  %v1220_v35 = vmul.f32 0.6931472, %v1850_v30  ;;  %v1852_v36 = vpop.eup %1851 }
 0x28b   : > { %v1248_v37 = vadd.f32 %v1222_v31, %v1200_v25  ;;  %1877 = vlog2.f32 %v1160_v20  ;;  %v1201_v49 = vadd.f32 28.571428, %v1176_v34  ;;  %v1180_v50 = vmul.f32 0.6931472, %v1852_v36 }
 0x28c   : > { %v1854_v38 = vpop.eup %1853  ;;  %v1247_v41 = vadd.f32 %v1220_v35, %v1199_v33  ;;  %1879 = vlog2.f32 %v1159_v32  ;;  %v1130_v42 = vpop.xlane.xlu1 %1129  ;;  %v1204_v57 = vadd.f32 28.571428, %v1182_v40 }
 0x28d   : > { %v1128_v43 = vpop.xlane.xlu0 %1127  ;;  %v1856_v44 = vpop.eup %1855  ;;  %1265 = vst.msk [vmem:[%s2383_s18 + $0x28] sm:$0xff] %vm1259_vm0, %v1248_v37  ;;  %v1226_v45 = vmul.f32 0.6931472, %v1854_v38  ;;  %v1162_v46 = vmax.f32 %v1130_v42, 1e-30 }
 0x28e   : > { %v1161_v47 = vmax.f32 %v1128_v43, 1e-30  ;;  %v1858_v48 = vpop.eup %1857  ;;  %1264 = vst.msk [vmem:[%s2383_s18 + $0x20] sm:$0xff] %vm1259_vm0, %v1247_v41  ;;  %v1224_v51 = vmul.f32 0.6931472, %v1856_v44 }
 0x28f   : > { %v1860_v52 = vpop.eup %1859  ;;  %v1250_v53 = vadd.f32 %v1226_v45, %v1202_v39  ;;  %1881 = vlog2.f32 %v1162_v46  ;;  %v1186_v58 = vmul.f32 0.6931472, %v1858_v48  ;;  %v1203_v61 = vadd.f32 28.571428, %v1180_v50 }
 0x290   : > { %v1862_v54 = vpop.eup %1861  ;;  %v1249_v55 = vadd.f32 %v1224_v51, %v1201_v49  ;;  %1883 = vlog2.f32 %v1161_v47  ;;  %v1184_v62 = vmul.f32 0.6931472, %v1860_v52 }
 0x291   : > { %v1864_v56 = vpop.eup %1863  ;;  %1267 = vst.msk [vmem:[%s2383_s18 + $0x38] sm:$0xff] %vm1259_vm0, %v1250_v53  ;;  %v1230_v59 = vmul.f32 0.6931472, %v1862_v54  ;;  %v1206_v5 = vadd.f32 28.571428, %v1186_v58 }
 0x292   : > { %v1866_v60 = vpop.eup %1865  ;;  %1266 = vst.msk [vmem:[%s2383_s18 + $0x30] sm:$0xff] %vm1259_vm0, %v1249_v55  ;;  %v1228_v63 = vmul.f32 0.6931472, %v1864_v56  ;;  %v1205_v9 = vadd.f32 28.571428, %v1184_v62 }
 0x293   : > { %v1868_v0 = vpop.eup %1867  ;;  %v1252_v1 = vadd.f32 %v1230_v59, %v1204_v57  ;;  %v1190_v6 = vmul.f32 0.6931472, %v1866_v60 }
 0x294   : > { %v1870_v2 = vpop.eup %1869  ;;  %v1251_v3 = vadd.f32 %v1228_v63, %v1203_v61  ;;  %v1188_v10 = vmul.f32 0.6931472, %v1868_v0 }
 0x295   : > { %v1872_v4 = vpop.eup %1871  ;;  %1269 = vst.msk [vmem:[%s2383_s18 + $0x48] sm:$0xff] %vm1259_vm0, %v1252_v1  ;;  %v1234_v7 = vmul.f32 0.6931472, %v1870_v2  ;;  %v1208_v17 = vadd.f32 28.571428, %v1190_v6 }
 0x296   : > { %v1874_v8 = vpop.eup %1873  ;;  %1268 = vst.msk [vmem:[%s2383_s18 + $0x40] sm:$0xff] %vm1259_vm0, %v1251_v3  ;;  %v1232_v11 = vmul.f32 0.6931472, %v1872_v4  ;;  %v1207_v19 = vadd.f32 28.571428, %v1188_v10 }
 0x297   : > { %v1876_v12 = vpop.eup %1875  ;;  %v1254_v13 = vadd.f32 %v1234_v7, %v1206_v5  ;;  %v1194_v18 = vmul.f32 0.6931472, %v1874_v8 }
 0x298   : > { %v1878_v14 = vpop.eup %1877  ;;  %v1253_v15 = vadd.f32 %v1232_v11, %v1205_v9  ;;  %v1192_v22 = vmul.f32 0.6931472, %v1876_v12 }
 0x299   : > { %v1880_v16 = vpop.eup %1879  ;;  %1271 = vst.msk [vmem:[%s2383_s18 + $0x58] sm:$0xff] %vm1259_vm0, %v1254_v13  ;;  %v1238_v21 = vmul.f32 0.6931472, %v1878_v14  ;;  %v1210_v28 = vadd.f32 28.571428, %v1194_v18 }
 0x29a   : > { %1270 = vst.msk [vmem:[%s2383_s18 + $0x50] sm:$0xff] %vm1259_vm0, %v1253_v15  ;;  %v1236_v23 = vmul.f32 0.6931472, %v1880_v16  ;;  %v1209_v30 = vadd.f32 28.571428, %v1192_v22 }
 0x29b   : > { %v1256_v24 = vadd.f32 %v1238_v21, %v1208_v17 }
 0x29c   : > { %v1882_v25 = vpop.eup %1881  ;;  %v1255_v26 = vadd.f32 %v1236_v23, %v1207_v19 }
 0x29d   : > { %v1884_v27 = vpop.eup %1883  ;;  %1273 = vst.msk [vmem:[%s2383_s18 + $0x68] sm:$0xff] %vm1259_vm0, %v1256_v24  ;;  %v1242_v29 = vmul.f32 0.6931472, %v1882_v25 }
 0x29e   : > { %1272 = vst.msk [vmem:[%s2383_s18 + $0x60] sm:$0xff] %vm1259_vm0, %v1255_v26  ;;  %v1240_v31 = vmul.f32 0.6931472, %v1884_v27 }
 0x29f   : > { %v1258_v20 = vadd.f32 %v1242_v29, %v1210_v28 }
 0x2a0   : > { %v1257_v32 = vadd.f32 %v1240_v31, %v1209_v30 }
 0x2a1   : > { %1275 = vst.msk [vmem:[%s2383_s18 + $0x78] sm:$0xff] %vm1259_vm0, %v1258_v20 }
 0x2a2   : > { %1274 = vst.msk [vmem:[%s2383_s18 + $0x70] sm:$0xff] %vm1259_vm0, %v1257_v32 }
 0x2a3 PF: > { %s23_s25 = sadd.s32 1, %s2099_s25   ;;  %s2543_s29 = sld [smem:[#allocation16_spill]] }
 0x2a4   : > { %p20_p9 = scmp.ge.s32.totalorder %s23_s25, 6   ;;  %s2544_s15 = smov %s2063_s16 }
 0x2a5   : > { %s2545_s16 = smov %s2067_s17  ;;  %s2546_s17 = smov %s2299_s27 }
 0x2a6   : > { %s2547_s18 = smov %s2075_s19  ;;  %s2548_s19 = smov %s2079_s20 }
 0x2a7   : > { %s2549_s20 = smov %s2311_s0  ;;  %s2550_s21 = smov %s2091_s23 }
 0x2a8   : > { %s2551_s22 = smov %s2095_s24  ;;  %s2552_s23 = smov %s2555_s1 }
 0x2a9   : > { %s2553_s24 = smov %s2543_s29  ;;  %22 = sbr.rel (!%p20_p9) target bundleno = 16 (0x10), region = 121 }
 0x2ae   :  { %1298 = vsyncpa [#allocation5], 1 }
 0x2af   :  { %1300 = vsyncpa [#allocation5 + $0x1], 1 }
 0x2b0   :  { %1301 = vsyncpa [#allocation7], 1 }
 0x2b1   :  { %1303 = vsyncpa [#allocation7 + $0x1], 1 }
 0x2b2   :  { %1304 = vsyncpa [#allocation10], 1 }
 0x2b3   :  { %1306 = vsyncpa [#allocation10 + $0x1], 1 }

</bundles_post_ra>
